<compile_context>
chip_gen: v7x
topology: tpu7x:2x2x1
jax: 0.10.0
libtpu: 0.0.40
codegen_flags: <defaults>
</compile_context>

<pallas_src>
import jax
import jax.numpy as jnp
from jax.experimental import pallas as pl
from jax.experimental.pallas import tpu as pltpu

LANE = 128


def _round_up(n, m):
    return ((n + m - 1) // m) * m


# ---------------------------------------------------------------------------
# Pallas kernel: MLP(ReLU) + final Linear + numerically-stable softmax.
# Weights arrive pre-padded (hidden dims -> multiples of 128, final layer
# exact width) and pre-cast to compute_dtype; biases are f32.
# ---------------------------------------------------------------------------
def _make_critic_dd_kernel(n_hidden, compute_dtype):
    def kernel(xu_ref, *refs):
        out_ref = refs[-1]
        p = refs[:-1]

        h = xu_ref[...]            # already compute_dtype (cast in wrapper)

        idx = 0
        for _ in range(n_hidden):
            w = p[idx][...]        # compute_dtype, lane-dense
            b = p[idx + 1][...]    # f32
            idx += 2
            h = jnp.dot(h, w, preferred_element_type=jnp.float32) + b
            h = jnp.maximum(h, 0.0).astype(compute_dtype)

        wf = p[idx][...]           # (H_pad, num_atoms), compute_dtype
        bf = p[idx + 1][...]       # (1, num_atoms), f32
        logits = jnp.dot(h, wf, preferred_element_type=jnp.float32) + bf

        # Numerically-stable softmax over the (exact-width) atom axis.
        m = jnp.max(logits, axis=-1, keepdims=True)
        e = jnp.exp(logits - m)
        s = jnp.sum(e, axis=-1, keepdims=True)
        inv = pl.reciprocal(s, approx=True)      # EUP
        inv = inv * (2.0 - s * inv)              # one Newton step -> ~f32 accuracy
        out_ref[...] = (e * inv).astype(out_ref.dtype)

    return kernel


# ---------------------------------------------------------------------------
# Parameter padding (hidden widths -> multiples of 128; final layer exact).
# params: [(W[in, out], b[1, out]), ...]  hidden layers then final layer.
# ---------------------------------------------------------------------------
def _prepare_kernel_params(params, lane=LANE):
    n_hidden = len(params) - 1
    prepared = []
    prev_pad = params[0][0].shape[0]          # = state_size + action_size
    for li in range(n_hidden):
        w, b = params[li]
        rpad = prev_pad - w.shape[0]
        out_pad = _round_up(w.shape[1], lane)
        cpad = out_pad - w.shape[1]
        prepared.append((jnp.pad(w, ((0, rpad), (0, cpad))),
                         jnp.pad(b, ((0, 0), (0, cpad)))))
        prev_pad = out_pad
    wf, bf = params[-1]
    rpad = prev_pad - wf.shape[0]
    prepared.append((jnp.pad(wf, ((0, rpad), (0, 0))), bf))   # no lane padding
    return prepared


# ---------------------------------------------------------------------------
# Forward wrapper.
# ---------------------------------------------------------------------------
def critic_net_dd_forward(x, u, params, *, tile_b=2048,
                          compute_dtype=jnp.bfloat16):
    """CriticNetDD.forward: softmax(MLP([x, u])) over num_atoms."""
    batch = x.shape[0]
    n_hidden = len(params) - 1
    num_atoms = params[-1][0].shape[1]

    # Single streamed input: fuse the concat in the wrapper (S, A are tiny) and
    # cast to the MXU operand dtype once (halves the streamed-input bytes).
    xu = jnp.concatenate([x, u], axis=-1).astype(compute_dtype)
    in_dim = xu.shape[1]

    prepared = _prepare_kernel_params(params)
    weight_ops = []
    for w, b in prepared:
        weight_ops += [w.astype(compute_dtype), b.astype(jnp.float32)]

    # --- batch tiling -------------------------------------------------------
    tile_b = max(8, min(_round_up(tile_b, 8), _round_up(batch, 8)))
    # v7x: with >= 2 grid steps the "parallel" batch axis feeds both TCs.
    if batch >= 1024:
        tile_b = min(tile_b, _round_up((batch + 1) // 2, 8))
    grid = (pl.cdiv(batch, tile_b),)

    in_specs = [pl.BlockSpec((tile_b, in_dim), lambda i: (i, 0))]
    # Constant block index -> weights/biases stay VMEM-resident across steps.
    in_specs += [pl.BlockSpec(a.shape, lambda i: (0, 0)) for a in weight_ops]
    out_specs = pl.BlockSpec((tile_b, num_atoms), lambda i: (i, 0))

    # --- explicit VMEM budget (double-buffered tiles + resident weights) -----
    cd_bytes = jnp.dtype(compute_dtype).itemsize
    weight_bytes = sum(int(a.size) * a.dtype.itemsize for a in weight_ops)
    in_tile_bytes = tile_b * in_dim * cd_bytes
    out_tile_bytes = tile_b * num_atoms * 4
    max_hidden_pad = max(w.shape[1] for w, _ in prepared[:n_hidden])
    act_bytes = 3 * tile_b * max_hidden_pad * 4        # f32 activation temps
    vmem_need = 2 * (in_tile_bytes + out_tile_bytes) + 2 * weight_bytes + act_bytes
    vmem_limit = min(max(int(vmem_need * 1.5) + (2 << 20), 16 << 20), 64 << 20)

    # --- cost estimate (documents the roofline; helps XLA scheduling) --------
    flops = 0
    k = in_dim
    for w, _ in prepared:
        flops += 2 * batch * k * w.shape[1]
        k = w.shape[1]
    cost = pl.CostEstimate(
        flops=int(flops),
        transcendentals=int(batch * num_atoms),
        bytes_accessed=int(batch * in_dim * cd_bytes
                           + batch * num_atoms * 4
                           + weight_bytes),
    )

    kernel = _make_critic_dd_kernel(n_hidden, compute_dtype)
    out = pl.pallas_call(
        kernel,
        out_shape=jax.ShapeDtypeStruct((batch, num_atoms), jnp.float32),
        grid=grid,
        in_specs=in_specs,
        out_specs=out_specs,
        compiler_params=pltpu.CompilerParams(
            dimension_semantics=("parallel",),
            vmem_limit_bytes=vmem_limit,
        ),
        cost_estimate=cost,
    )(xu, *weight_ops)
    return out


def get_atoms(vmin, vmax, num_atoms):
    return jnp.linspace(vmin, vmax, num_atoms)


# ---------------------------------------------------------------------------
# Deterministic parameter construction (orthogonal weights, as in the module).
# ---------------------------------------------------------------------------
def _orthogonal(key, in_dim, out_dim):
    n = max(in_dim, out_dim)
    a = jax.random.normal(key, (n, n), dtype=jnp.float32)
    q, r = jnp.linalg.qr(a)
    s = jnp.sign(jnp.diag(r))
    s = jnp.where(s == 0, 1.0, s)
    q = q * s[None, :]
    # Stored as [in, out] (transpose of PyTorch's [out, in]).
    return q[:in_dim, :out_dim]


def make_params(key, state_size, action_size, hidden_sizes, num_atoms):
    params = []
    in_dim = state_size + action_size
    dims = list(hidden_sizes) + [num_atoms]
    for out_dim in dims:
        kw, kb, key = jax.random.split(key, 3)
        w = _orthogonal(kw, in_dim, out_dim)
        bound = 1.0 / jnp.sqrt(in_dim)
        b = jax.random.uniform(
            kb, (1, out_dim), minval=-bound, maxval=bound, dtype=jnp.float32)
        params.append((w, b))
        in_dim = out_dim
    return params


# ---------------------------------------------------------------------------
# Reference forward in plain JAX (sanity check).
# ---------------------------------------------------------------------------
def reference_forward(x, u, params):
    h = jnp.concatenate([x, u], axis=-1)
    for w, b in params[:-1]:
        h = jnp.maximum(h @ w + b, 0.0)
    wf, bf = params[-1]
    logits = h @ wf + bf
    return jax.nn.softmax(logits, axis=-1)


if __name__ == "__main__":
    # Small, module-consistent shapes; batch deliberately not a multiple of the
    # small tile to exercise the partial-block path.
    batch = 60
    state_size = 12
    action_size = 4
    hidden_sizes = [32, 32]
    num_atoms = 16
    Vmin, Vmax = -10.0, 10.0

    key = jax.random.PRNGKey(0)
    kx, ku, kp = jax.random.split(key, 3)
    x = jax.random.normal(kx, (batch, state_size), dtype=jnp.float32)
    u = jax.random.normal(ku, (batch, action_size), dtype=jnp.float32)
    params = make_params(kp, state_size, action_size, hidden_sizes, num_atoms)

    ref = reference_forward(x, u, params)

    # 1) f32 operand path, single-tile grid (default tile sizing).
    probs_f32 = jax.block_until_ready(
        critic_net_dd_forward(x, u, params, compute_dtype=jnp.float32))
    assert probs_f32.shape == (batch, num_atoms)
    assert jnp.allclose(probs_f32, ref, atol=1e-4, rtol=1e-4)

    # 2) f32 operand path, multi-step grid with a partial last block.
    probs_tiled = jax.block_until_ready(
        critic_net_dd_forward(x, u, params, tile_b=16,
                              compute_dtype=jnp.float32))
    assert jnp.allclose(probs_tiled, ref, atol=1e-4, rtol=1e-4)

    # 3) default bf16 MXU-operand path (f32 accumulation / softmax).
    probs_bf16 = jax.block_until_ready(critic_net_dd_forward(x, u, params))
    assert probs_bf16.shape == (batch, num_atoms)
    assert jnp.allclose(probs_bf16, ref, atol=3e-2, rtol=3e-2)
    assert jnp.allclose(jnp.sum(probs_bf16, axis=-1), 1.0, atol=1e-4)
    assert bool(jnp.all(probs_bf16 >= 0.0))

    atoms = get_atoms(Vmin, Vmax, num_atoms)   # plain-JAX glue (linspace)
    assert atoms.shape == (num_atoms,)

    print("KERNEL_OK")
</pallas_src>

<mosaic_0001>
module attributes {stable_mosaic.version = 11 : i64} {
  func.func @kernel(%arg0: i32, %arg1: memref<64x16xf32, #tpu.memory_space<vmem>>, %arg2: memref<16x128xf32, #tpu.memory_space<vmem>>, %arg3: memref<1x128xf32, #tpu.memory_space<vmem>>, %arg4: memref<128x128xf32, #tpu.memory_space<vmem>>, %arg5: memref<1x128xf32, #tpu.memory_space<vmem>>, %arg6: memref<128x16xf32, #tpu.memory_space<vmem>>, %arg7: memref<1x16xf32, #tpu.memory_space<vmem>>, %arg8: memref<64x16xf32, #tpu.memory_space<vmem>>) attributes {dimension_semantics = [#tpu.dimension_semantics<parallel>], iteration_bounds = array<i64: 1>, scalar_prefetch = 0 : i64, scratch_operands = 0 : i64, tpu.core_type = #tpu.core_type<tc>, window_params = [{transform_indices = @transform_0, window_bounds = array<i64: 64, 16>}, {pipeline_mode = #tpu.pipeline_mode<synchronous>, transform_indices = @transform_1, window_bounds = array<i64: 16, 128>}, {pipeline_mode = #tpu.pipeline_mode<synchronous>, transform_indices = @transform_2, window_bounds = array<i64: 1, 128>}, {pipeline_mode = #tpu.pipeline_mode<synchronous>, transform_indices = @transform_3, window_bounds = array<i64: 128, 128>}, {pipeline_mode = #tpu.pipeline_mode<synchronous>, transform_indices = @transform_4, window_bounds = array<i64: 1, 128>}, {pipeline_mode = #tpu.pipeline_mode<synchronous>, transform_indices = @transform_5, window_bounds = array<i64: 128, 16>}, {pipeline_mode = #tpu.pipeline_mode<synchronous>, transform_indices = @transform_6, window_bounds = array<i64: 1, 16>}, {transform_indices = @transform_7, window_bounds = array<i64: 64, 16>}]} {
    %c0 = arith.constant 0 : index
    %c0_0 = arith.constant 0 : index
    %0 = vector.load %arg1[%c0, %c0_0] : memref<64x16xf32, #tpu.memory_space<vmem>>, vector<64x16xf32>
    %c0_1 = arith.constant 0 : index
    %c0_2 = arith.constant 0 : index
    %1 = vector.load %arg2[%c0_1, %c0_2] : memref<16x128xf32, #tpu.memory_space<vmem>>, vector<16x128xf32>
    %c0_3 = arith.constant 0 : index
    %c0_4 = arith.constant 0 : index
    %2 = vector.load %arg3[%c0_3, %c0_4] : memref<1x128xf32, #tpu.memory_space<vmem>>, vector<1x128xf32>
    %cst = arith.constant dense<0.000000e+00> : vector<64x128xf32>
    %3 = tpu.matmul %0, %1, %cst {dimension_numbers = #tpu.dot_dimension_numbers<[1], [0], [0], [1], [0, 0, 1, 1], [], []>} : vector<64x16xf32>, vector<16x128xf32>, vector<64x128xf32> -> vector<64x128xf32>
    %4 = vector.broadcast %2 : vector<1x128xf32> to vector<64x128xf32>
    %5 = arith.addf %3, %4 : vector<64x128xf32>
    %cst_5 = arith.constant 0.000000e+00 : f32
    %6 = vector.broadcast %cst_5 : f32 to vector<64x128xf32>
    %7 = arith.maximumf %5, %6 : vector<64x128xf32>
    %c0_6 = arith.constant 0 : index
    %c0_7 = arith.constant 0 : index
    %8 = vector.load %arg4[%c0_6, %c0_7] : memref<128x128xf32, #tpu.memory_space<vmem>>, vector<128x128xf32>
    %c0_8 = arith.constant 0 : index
    %c0_9 = arith.constant 0 : index
    %9 = vector.load %arg5[%c0_8, %c0_9] : memref<1x128xf32, #tpu.memory_space<vmem>>, vector<1x128xf32>
    %cst_10 = arith.constant dense<0.000000e+00> : vector<64x128xf32>
    %10 = tpu.matmul %7, %8, %cst_10 {dimension_numbers = #tpu.dot_dimension_numbers<[1], [0], [0], [1], [0, 0, 1, 1], [], []>} : vector<64x128xf32>, vector<128x128xf32>, vector<64x128xf32> -> vector<64x128xf32>
    %11 = vector.broadcast %9 : vector<1x128xf32> to vector<64x128xf32>
    %12 = arith.addf %10, %11 : vector<64x128xf32>
    %cst_11 = arith.constant 0.000000e+00 : f32
    %13 = vector.broadcast %cst_11 : f32 to vector<64x128xf32>
    %14 = arith.maximumf %12, %13 : vector<64x128xf32>
    %c0_12 = arith.constant 0 : index
    %c0_13 = arith.constant 0 : index
    %15 = vector.load %arg6[%c0_12, %c0_13] : memref<128x16xf32, #tpu.memory_space<vmem>>, vector<128x16xf32>
    %c0_14 = arith.constant 0 : index
    %c0_15 = arith.constant 0 : index
    %16 = vector.load %arg7[%c0_14, %c0_15] : memref<1x16xf32, #tpu.memory_space<vmem>>, vector<1x16xf32>
    %cst_16 = arith.constant dense<0.000000e+00> : vector<64x16xf32>
    %17 = tpu.matmul %14, %15, %cst_16 {dimension_numbers = #tpu.dot_dimension_numbers<[1], [0], [0], [1], [0, 0, 1, 1], [], []>} : vector<64x128xf32>, vector<128x16xf32>, vector<64x16xf32> -> vector<64x16xf32>
    %18 = vector.broadcast %16 : vector<1x16xf32> to vector<64x16xf32>
    %19 = arith.addf %17, %18 : vector<64x16xf32>
    %cst_17 = arith.constant dense<0xFF800000> : vector<64xf32>
    %20 = vector.multi_reduction <maximumf>, %19, %cst_17 [1] : vector<64x16xf32> to vector<64xf32>
    %21 = vector.shape_cast %20 : vector<64xf32> to vector<64x1xf32>
    %22 = vector.broadcast %21 : vector<64x1xf32> to vector<64x16xf32>
    %23 = arith.subf %19, %22 : vector<64x16xf32>
    %24 = math.exp %23 : vector<64x16xf32>
    %cst_18 = arith.constant dense<0.000000e+00> : vector<64xf32>
    %25 = vector.multi_reduction <add>, %24, %cst_18 [1] : vector<64x16xf32> to vector<64xf32>
    %26 = vector.shape_cast %25 : vector<64xf32> to vector<64x1xf32>
    %27 = tpu.reciprocal %26 {approx = true} : vector<64x1xf32> -> vector<64x1xf32>
    %28 = arith.mulf %26, %27 : vector<64x1xf32>
    %cst_19 = arith.constant 2.000000e+00 : f32
    %29 = vector.broadcast %cst_19 : f32 to vector<64x1xf32>
    %30 = arith.subf %29, %28 : vector<64x1xf32>
    %31 = arith.mulf %27, %30 : vector<64x1xf32>
    %32 = vector.broadcast %31 : vector<64x1xf32> to vector<64x16xf32>
    %33 = arith.mulf %24, %32 : vector<64x16xf32>
    %c0_20 = arith.constant 0 : index
    %c0_21 = arith.constant 0 : index
    %34 = vector.load %arg8[%c0_20, %c0_21] : memref<64x16xf32, #tpu.memory_space<vmem>>, vector<64x16xf32>
    tpu.vector_store %arg8[%c0_20, %c0_21], %33 {strides = array<i32>} : memref<64x16xf32, #tpu.memory_space<vmem>>, vector<64x16xf32>,
    return
  }
  func.func @transform_0(%arg0: i32) -> (i32, i32) {
    %c0_i32 = arith.constant 0 : i32
    %c0_i32_0 = arith.constant 0 : i32
    return %arg0, %c0_i32 : i32, i32
  }
  func.func @transform_1(%arg0: i32) -> (i32, i32) {
    %c0_i32 = arith.constant 0 : i32
    %c0_i32_0 = arith.constant 0 : i32
    %c0_i32_1 = arith.constant 0 : i32
    return %c0_i32, %c0_i32_0 : i32, i32
  }
  func.func @transform_2(%arg0: i32) -> (i32, i32) {
    %c0_i32 = arith.constant 0 : i32
    %c0_i32_0 = arith.constant 0 : i32
    %c0_i32_1 = arith.constant 0 : i32
    return %c0_i32, %c0_i32_0 : i32, i32
  }
  func.func @transform_3(%arg0: i32) -> (i32, i32) {
    %c0_i32 = arith.constant 0 : i32
    %c0_i32_0 = arith.constant 0 : i32
    %c0_i32_1 = arith.constant 0 : i32
    return %c0_i32, %c0_i32_0 : i32, i32
  }
  func.func @transform_4(%arg0: i32) -> (i32, i32) {
    %c0_i32 = arith.constant 0 : i32
    %c0_i32_0 = arith.constant 0 : i32
    %c0_i32_1 = arith.constant 0 : i32
    return %c0_i32, %c0_i32_0 : i32, i32
  }
  func.func @transform_5(%arg0: i32) -> (i32, i32) {
    %c0_i32 = arith.constant 0 : i32
    %c0_i32_0 = arith.constant 0 : i32
    %c0_i32_1 = arith.constant 0 : i32
    return %c0_i32, %c0_i32_0 : i32, i32
  }
  func.func @transform_6(%arg0: i32) -> (i32, i32) {
    %c0_i32 = arith.constant 0 : i32
    %c0_i32_0 = arith.constant 0 : i32
    %c0_i32_1 = arith.constant 0 : i32
    return %c0_i32, %c0_i32_0 : i32, i32
  }
  func.func @transform_7(%arg0: i32) -> (i32, i32) {
    %c0_i32 = arith.constant 0 : i32
    %c0_i32_0 = arith.constant 0 : i32
    return %arg0, %c0_i32 : i32, i32
  }
}

</mosaic_0001>

<bundles_post_ra>
// kernel: tpu_custom_call.1
= control target key start
LH: loop header
LB: loop body
LE: loop exit
PB: predicated region body
PF: predicated region fallthrough
CT: control target
= control target key end

     0   :  { %vm43_vm0 = vcmask 130048   ;;  %s1089_s1 = inlined_call_operand.vmem [shape: f32[16,128], index: 1, kind: input, shape index: {}]   ;;  %s1090_s0 = inlined_call_operand.vmem [shape: f32[60,16], index: 0, kind: input, shape index: {}]   ;;  %s1091_s3 = inlined_call_operand.vmem [shape: f32[128,128], index: 3, kind: input, shape index: {}]   ;;  %s1092_s5 = inlined_call_operand.vmem [shape: f32[128,16], index: 5, kind: input, shape index: {}]   ;;  %s1093_s2 = inlined_call_operand.vmem [shape: f32[1,128], index: 2, kind: input, shape index: {}]   ;;  %s1094_s4 = inlined_call_operand.vmem [shape: f32[1,128], index: 4, kind: input, shape index: {}]   ;;  %s1095_s6 = inlined_call_operand.vmem [shape: f32[1,16], index: 6, kind: input, shape index: {}]   ;;  %s1096_s7 = inlined_call_operand.vmem [shape: f32[60,16], index: 7, kind: output, shape index: {}]  }
   0x1   :  { %v34_v0 = vld [vmem:[%s1089_s1] sm:$0xff]  ;;  %v35_v1 = vld [vmem:[%s1089_s1 + $0x8] sm:$0xff]  ;;  %v183_v8 = vld [vmem:[%s1091_s3 + $0x10] sm:$0xff] }
   0x2   :  { %v26_v2 = vld [vmem:[%s1090_s0] sm:$0xff]  ;;  %v742_v3 = vpack.c.bf16 %v35_v1, %v34_v0  ;;  %v182_v5 = vld [vmem:[%s1091_s3 + $0x8] sm:$0xff]  ;;  %v184_v9 = vld [vmem:[%s1091_s3 + $0x18] sm:$0xff] }
   0x3   :  { %642 = vmatprep.mubr.msk.f32.mxu0 %vm43_vm0, %v26_v2  ;;  %v181_v4 = vld [vmem:[%s1091_s3] sm:$0xff]  ;;  %v27_v6 = vld [vmem:[%s1090_s0 + $0x8] sm:$0xff]  ;;  %v28_v10 = vld [vmem:[%s1090_s0 + $0x10] sm:$0xff]  ;;  %v750_v11 = vpack.c.bf16 %v184_v9, %v183_v8 }
   0x4   :  { %743 = vmatprep.subr.bf16.mxu0 %v742_v3  ;;  %v746_v7 = vpack.c.bf16 %v182_v5, %v181_v4  ;;  %v185_v12 = vld [vmem:[%s1091_s3 + $0x20] sm:$0xff]  ;;  %v186_v13 = vld [vmem:[%s1091_s3 + $0x28] sm:$0xff]  ;;  %v29_v14 = vld [vmem:[%s1090_s0 + $0x18] sm:$0xff] }
   0x5   :  { %745 = vmatpush3.bf16.msra.mxu0 %v742_v3  ;;  %v754_v15 = vpack.c.bf16 %v186_v13, %v185_v12  ;;  %v30_v16 = vld [vmem:[%s1090_s0 + $0x20] sm:$0xff]  ;;  %v187_v17 = vld [vmem:[%s1091_s3 + $0x30] sm:$0xff]  ;;  %v188_v18 = vld [vmem:[%s1091_s3 + $0x38] sm:$0xff] }
   0x6   :  { %747 = vmatprep.subr.bf16.mxu1 %v746_v7  ;;  %v31_v19 = vld [vmem:[%s1090_s0 + $0x28] sm:$0xff]  ;;  %v758_v20 = vpack.c.bf16 %v188_v18, %v187_v17  ;;  %v32_v21 = vld [vmem:[%s1090_s0 + $0x30] sm:$0xff]  ;;  %v189_v22 = vld [vmem:[%s1091_s3 + $0x40] sm:$0xff] }
   0x7   :  { %749 = vmatpush3.bf16.msra.mxu1 %v746_v7  ;;  %v190_v23 = vld [vmem:[%s1091_s3 + $0x48] sm:$0xff]  ;;  %v33_v24 = vld [vmem:[%s1090_s0 + $0x38] sm:$0xff]  ;;  %v191_v26 = vld [vmem:[%s1091_s3 + $0x50] sm:$0xff] }
   0x8   :  { %643 = vmatmul.mubr.msk.f32.vlgmr.msra.gmra.mrb[0].mxu0 %vm43_vm0, %v27_v6  ;;  %751 = vmatprep.subr.bf16.mxu1 %v750_v11  ;;  %v762_v25 = vpack.c.bf16 %v190_v23, %v189_v22  ;;  %v192_v27 = vld [vmem:[%s1091_s3 + $0x58] sm:$0xff]  ;;  %v193_v29 = vld [vmem:[%s1091_s3 + $0x60] sm:$0xff]  ;;  %v194_v30 = vld [vmem:[%s1091_s3 + $0x68] sm:$0xff] }
   0x9   :  { %645 = vmatprep.mubr.msk.f32.mxu0 %vm43_vm0, %v28_v10  ;;  %v766_v28 = vpack.c.bf16 %v192_v27, %v191_v26  ;;  %v770_v31 = vpack.c.bf16 %v194_v30, %v193_v29  ;;  %v195_v32 = vld [vmem:[%s1091_s3 + $0x70] sm:$0xff]  ;;  %v196_v33 = vld [vmem:[%s1091_s3 + $0x78] sm:$0xff]  ;;  %v317_v35 = vld [vmem:[%s1092_s5] sm:$0xff] }
   0xa   :  { %v774_v34 = vpack.c.bf16 %v196_v33, %v195_v32  ;;  %v318_v36 = vld [vmem:[%s1092_s5 + $0x8] sm:$0xff]  ;;  %v319_v37 = vld [vmem:[%s1092_s5 + $0x10] sm:$0xff]  ;;  %v320_v39 = vld [vmem:[%s1092_s5 + $0x18] sm:$0xff] }
   0xb   :  { %753 = vmatpush3.bf16.msra.mxu1 %v750_v11  ;;  %v778_v38 = vpack.c.bf16 %v318_v36, %v317_v35  ;;  %v782_v40 = vpack.c.bf16 %v320_v39, %v319_v37  ;;  %v321_v41 = vld [vmem:[%s1092_s5 + $0x20] sm:$0xff]  ;;  %v322_v42 = vld [vmem:[%s1092_s5 + $0x28] sm:$0xff]  ;;  %v323_v44 = vld [vmem:[%s1092_s5 + $0x30] sm:$0xff] }
   0xc   :  { %646 = vmatmul.mubr.msk.f32.gmra.mrb[2].mxu0 %vm43_vm0, %v29_v14  ;;  %755 = vmatprep.subr.bf16.mxu1 %v754_v15  ;;  %v786_v43 = vpack.c.bf16 %v322_v42, %v321_v41  ;;  %v324_v45 = vld [vmem:[%s1092_s5 + $0x38] sm:$0xff]  ;;  %v325_v47 = vld [vmem:[%s1092_s5 + $0x40] sm:$0xff]  ;;  %v326_v48 = vld [vmem:[%s1092_s5 + $0x48] sm:$0xff] }
   0xd   :  { %648 = vmatprep.mubr.msk.f32.mxu0 %vm43_vm0, %v30_v16  ;;  %779 = vmatprep.subr.bf16.mxu0 %v778_v38  ;;  %v790_v46 = vpack.c.bf16 %v324_v45, %v323_v44  ;;  %v794_v49 = vpack.c.bf16 %v326_v48, %v325_v47  ;;  %v327_v50 = vld [vmem:[%s1092_s5 + $0x50] sm:$0xff]  ;;  %v328_v51 = vld [vmem:[%s1092_s5 + $0x58] sm:$0xff]  ;;  %v329_v53 = vld [vmem:[%s1092_s5 + $0x60] sm:$0xff] }
   0xe   :  { %781 = vmatpush3.bf16.msra.mxu0 %v778_v38  ;;  %v798_v52 = vpack.c.bf16 %v328_v51, %v327_v50  ;;  %v330_v54 = vld [vmem:[%s1092_s5 + $0x68] sm:$0xff]  ;;  %v569_v56 = vld [vmem:[%s1093_s2] ss:$0 sm:$0xff]  ;;  %v331_v17 = vld [vmem:[%s1092_s5 + $0x70] sm:$0xff] }
   0xf   :  { %757 = vmatpush3.bf16.msra.mxu1 %v754_v15  ;;  %783 = vmatprep.subr.bf16.mxu0 %v782_v40  ;;  %v802_v55 = vpack.c.bf16 %v330_v54, %v329_v53  ;;  %v332_v18 = vld [vmem:[%s1092_s5 + $0x78] sm:$0xff]  ;;  %v579_v45 = vld [vmem:[%s1095_s6] ss:$0 sm:$0xff] }
  0x10   :  { %649 = vmatmul.mubr.msk.f32.gmra.mrb[4].mxu0 %vm43_vm0, %v31_v19  ;;  %759 = vmatprep.subr.bf16.mxu1 %v758_v20  ;;  %v806_v19 = vpack.c.bf16 %v332_v18, %v331_v17 }
  0x11   :  { %651 = vmatprep.mubr.msk.f32.mxu0 %vm43_vm0, %v32_v21 }
  0x12   :  { %785 = vmatpush3.bf16.msra.mxu0 %v782_v40 }
  0x13   :  { %761 = vmatpush3.bf16.msra.mxu1 %v758_v20  ;;  %787 = vmatprep.subr.bf16.mxu0 %v786_v43  ;;  %v578_v20 = vld [vmem:[%s1094_s4] ss:$0 sm:$0xff] }
  0x14   :  { %652 = vmatmul.mubr.msk.f32.gmra.mrb[6].mxu0 %vm43_vm0, %v33_v24  ;;  %763 = vmatprep.subr.bf16.mxu1 %v762_v25 }
  0x16   :  { %789 = vmatpush3.bf16.msra.mxu0 %v786_v43 }
  0x17   :  { %765 = vmatpush3.bf16.msra.mxu1 %v762_v25  ;;  %791 = vmatprep.subr.bf16.mxu0 %v790_v46 }
  0x18   :  { %767 = vmatprep.subr.bf16.mxu1 %v766_v28 }
  0x1a   :  { %793 = vmatpush3.bf16.msra.mxu0 %v790_v46 }
  0x1b   :  { %769 = vmatpush3.bf16.msra.mxu1 %v766_v28  ;;  %795 = vmatprep.subr.bf16.mxu0 %v794_v49 }
  0x1c   :  { %771 = vmatprep.subr.bf16.mxu1 %v770_v31 }
  0x1e   :  { %797 = vmatpush3.bf16.msra.mxu0 %v794_v49 }
  0x1f   :  { %773 = vmatpush3.bf16.msra.mxu1 %v770_v31  ;;  %799 = vmatprep.subr.bf16.mxu0 %v798_v52 }
  0x20   :  { %775 = vmatprep.subr.bf16.mxu1 %v774_v34 }
  0x22   :  { %801 = vmatpush3.bf16.msra.mxu0 %v798_v52 }
  0x23   :  { %777 = vmatpush3.bf16.msra.mxu1 %v774_v34  ;;  %803 = vmatprep.subr.bf16.mxu0 %v802_v55 }
  0x26   :  { %805 = vmatpush3.bf16.msra.mxu0 %v802_v55 }
  0x27   :  { %807 = vmatprep.subr.bf16.mxu0 %v806_v19 }
  0x2a   :  { %809 = vmatpush3.bf16.msra.mxu0 %v806_v19 }
  0xdb   :  { %v644_v57 = vpop.f32.mrb[0].mxu0 }
  0xdc   :  { %v140_v58 = vadd.f32 %v644_v57, %v569_v56  ;;  %v134_v59 = vpop.f32.mrb[1].mxu0 }
  0xdd   :  { %v135_v60 = vadd.f32 %v569_v56, %v134_v59 }
  0xde   :  { %v174_v63 = vmax.f32 %v140_v58, 0.0 }
  0xdf   :  { %v647_v61 = vpop.f32.mrb[2].mxu0  ;;  %v173_v62 = vmax.f32 %v135_v60, 0.0 }
  0xe0   :  { %v150_v0 = vadd.f32 %v647_v61, %v569_v56  ;;  %v144_v1 = vpop.f32.mrb[3].mxu0 }
  0xe1   :  { %v145_v2 = vadd.f32 %v569_v56, %v144_v1  ;;  %686 = vmatprep.mubr.f32.mxu1 %v173_v62 }
  0xe2   :  { %687 = vmatmul.mubr.f32.vlgmr.msra.gmra.mrb[0].mxu1 %v174_v63  ;;  %v176_v5 = vmax.f32 %v150_v0, 0.0 }
  0xe3   :  { %v175_v3 = vmax.f32 %v145_v2, 0.0  ;;  %v650_v4 = vpop.f32.mrb[4].mxu0 }
  0xe4   :  { %v160_v6 = vadd.f32 %v650_v4, %v569_v56  ;;  %v154_v7 = vpop.f32.mrb[5].mxu0 }
  0xe5   :  { %v155_v8 = vadd.f32 %v569_v56, %v154_v7  ;;  %689 = vmatprep.mubr.f32.mxu1 %v175_v3 }
  0xe6   :  { %v178_v9 = vmax.f32 %v160_v6, 0.0  ;;  %690 = vmatmul.mubr.f32.gmra.mrb[2].mxu1 %v176_v5 }
  0xe7   :  { %v177_v10 = vmax.f32 %v155_v8, 0.0  ;;  %v653_v11 = vpop.f32.mrb[6].mxu0 }
  0xe8   :  { %v170_v12 = vadd.f32 %v653_v11, %v569_v56  ;;  %v164_v13 = vpop.f32.mrb[7].mxu0 }
  0xe9   :  { %v165_v14 = vadd.f32 %v569_v56, %v164_v13  ;;  %692 = vmatprep.mubr.f32.mxu1 %v177_v10 }
  0xea   :  { %v180_v15 = vmax.f32 %v170_v12, 0.0  ;;  %693 = vmatmul.mubr.f32.gmra.mrb[4].mxu1 %v178_v9 }
  0xeb   :  { %v179_v16 = vmax.f32 %v165_v14, 0.0 }
  0xed   :  { %695 = vmatprep.mubr.f32.mxu1 %v179_v16 }
  0xee   :  { %696 = vmatmul.mubr.f32.gmra.mrb[6].mxu1 %v180_v15 }
 0x1b5   :  { %v688_v21 = vpop.f32.mrb[0].mxu1 }
 0x1b6   :  { %v276_v22 = vadd.f32 %v688_v21, %v578_v20  ;;  %v270_v23 = vpop.f32.mrb[1].mxu1 }
 0x1b7   :  { %v271_v24 = vadd.f32 %v578_v20, %v270_v23 }
 0x1b8   :  { %v310_v27 = vmax.f32 %v276_v22, 0.0 }
 0x1b9   :  { %v309_v25 = vmax.f32 %v271_v24, 0.0  ;;  %v691_v26 = vpop.f32.mrb[2].mxu1 }
 0x1ba   :  { %v286_v28 = vadd.f32 %v691_v26, %v578_v20  ;;  %v280_v29 = vpop.f32.mrb[3].mxu1 }
 0x1bb   :  { %v281_v30 = vadd.f32 %v578_v20, %v280_v29  ;;  %730 = vmatprep.mubr.f32.mxu0 %v309_v25 }
 0x1bc   :  { %731 = vmatmul.mubr.f32.vlgmr.msra.gmra.mrb[8].mxu0 %v310_v27  ;;  %v312_v33 = vmax.f32 %v286_v28, 0.0 }
 0x1bd   :  { %v311_v31 = vmax.f32 %v281_v30, 0.0  ;;  %v694_v32 = vpop.f32.mrb[4].mxu1 }
 0x1be   :  { %v296_v34 = vadd.f32 %v694_v32, %v578_v20  ;;  %v290_v35 = vpop.f32.mrb[5].mxu1 }
 0x1bf   :  { %v291_v36 = vadd.f32 %v578_v20, %v290_v35  ;;  %733 = vmatprep.mubr.f32.mxu0 %v311_v31 }
 0x1c0   :  { %v314_v37 = vmax.f32 %v296_v34, 0.0  ;;  %734 = vmatmul.mubr.f32.gmra.mrb[10].mxu0 %v312_v33 }
 0x1c1   :  { %v313_v38 = vmax.f32 %v291_v36, 0.0  ;;  %v697_v39 = vpop.f32.mrb[6].mxu1 }
 0x1c2   :  { %v306_v40 = vadd.f32 %v697_v39, %v578_v20  ;;  %v300_v41 = vpop.f32.mrb[7].mxu1 }
 0x1c3   :  { %v301_v42 = vadd.f32 %v578_v20, %v300_v41  ;;  %736 = vmatprep.mubr.f32.mxu0 %v313_v38 }
 0x1c4   :  { %v316_v43 = vmax.f32 %v306_v40, 0.0  ;;  %737 = vmatmul.mubr.f32.gmra.mrb[12].mxu0 %v314_v37 }
 0x1c5   :  { %v315_v44 = vmax.f32 %v301_v42, 0.0 }
 0x1c7   :  { %739 = vmatprep.mubr.f32.mxu0 %v315_v44 }
 0x1c8   :  { %740 = vmatmul.mubr.f32.gmra.mrb[14].mxu0 %v316_v43 }
 0x28f   :  { %v732_v46 = vpop.f32.mrb[8].mxu0 }
 0x290   :  { %v412_v47 = vadd.f32 %v732_v46, %v579_v45  ;;  %v406_v48 = vpop.f32.mrb[9].mxu0 }
 0x291   :  { %v407_v49 = vadd.f32 %v579_v45, %v406_v48 }
 0x292   :  { %v448_v50 = vsel %vm43_vm0, %v412_v47, -inf }
 0x293   :  { %449 = vmax.xlane.f32.xlu0 %v448_v50  ;;  %v735_v51 = vpop.f32.mrb[10].mxu0  ;;  %v445_v56 = vsel %vm43_vm0, %v407_v49, -inf }
 0x294   :  { %v422_v52 = vadd.f32 %v735_v51, %v579_v45  ;;  %v416_v53 = vpop.f32.mrb[11].mxu0 }
 0x295   :  { %v417_v54 = vadd.f32 %v579_v45, %v416_v53 }
 0x296   :  { %v454_v55 = vsel %vm43_vm0, %v422_v52, -inf }
 0x297   :  { %455 = vmax.xlane.f32.xlu1 %v454_v55  ;;  %v738_v57 = vpop.f32.mrb[12].mxu0  ;;  %446 = vmax.xlane.f32.xlu0 %v445_v56  ;;  %v451_v61 = vsel %vm43_vm0, %v417_v54, -inf }
 0x298   :  { %v426_v58 = vpop.f32.mrb[13].mxu0  ;;  %v432_v60 = vadd.f32 %v738_v57, %v579_v45 }
 0x299   :  { %v427_v59 = vadd.f32 %v579_v45, %v426_v58 }
 0x29a   :  { %v460_v3 = vsel %vm43_vm0, %v432_v60, -inf }
 0x29b   :  { %v741_v62 = vpop.f32.mrb[14].mxu0  ;;  %452 = vmax.xlane.f32.xlu1 %v451_v61  ;;  %v457_v63 = vsel %vm43_vm0, %v427_v59, -inf }
 0x29c   :  { %v436_v0 = vpop.f32.mrb[15].mxu0  ;;  %458 = vmax.xlane.f32.xlu0 %v457_v63  ;;  %v442_v2 = vadd.f32 %v741_v62, %v579_v45 }
 0x29d   :  { %v437_v1 = vadd.f32 %v579_v45, %v436_v0 }
 0x29e   :  { %v466_v5 = vsel %vm43_vm0, %v442_v2, -inf }
 0x29f   :  { %461 = vmax.xlane.f32.xlu1 %v460_v3  ;;  %v463_v4 = vsel %vm43_vm0, %v437_v1, -inf }
 0x2a0   :  { %464 = vmax.xlane.f32.xlu0 %v463_v4 }
 0x2a3   :  { %467 = vmax.xlane.f32.xlu1 %v466_v5 }
 0x320   :  { %v450_v6 = vpop.xlane.xlu0 %449 }
 0x321   :  { %v470_v7 = vsub.f32 %v412_v47, %v450_v6 }
 0x323   :  { %v479_v8 = vmul.f32 1.442695, %v470_v7 }
 0x324   :  { %v456_v9 = vpop.xlane.xlu1 %455  ;;  %v447_v10 = vpop.xlane.xlu0 %446 }
 0x325   :  { %810 = vpow2.f32 %v479_v8  ;;  %v472_v11 = vsub.f32 %v422_v52, %v456_v9  ;;  %v469_v12 = vsub.f32 %v407_v49, %v447_v10 }
 0x327   :  { %v483_v13 = vmul.f32 1.442695, %v472_v11  ;;  %v477_v14 = vmul.f32 1.442695, %v469_v12 }
 0x328   :  { %v453_v15 = vpop.xlane.xlu1 %452 }
 0x329   :  { %812 = vpow2.f32 %v483_v13  ;;  %v471_v16 = vsub.f32 %v417_v54, %v453_v15  ;;  %v459_v17 = vpop.xlane.xlu0 %458 }
 0x32a   :  { %814 = vpow2.f32 %v477_v14  ;;  %v473_v18 = vsub.f32 %v427_v59, %v459_v17 }
 0x32b   :  { %v481_v19 = vmul.f32 1.442695, %v471_v16 }
 0x32c   :  { %v485_v20 = vmul.f32 1.442695, %v473_v18  ;;  %v462_v21 = vpop.xlane.xlu1 %461 }
 0x32d   :  { %816 = vpow2.f32 %v481_v19  ;;  %v474_v22 = vsub.f32 %v432_v60, %v462_v21  ;;  %v465_v23 = vpop.xlane.xlu0 %464 }
 0x32e   :  { %v475_v24 = vsub.f32 %v437_v1, %v465_v23  ;;  %818 = vpow2.f32 %v485_v20 }
 0x32f   :  { %v811_v25 = vpop.eup %810  ;;  %v487_v26 = vmul.f32 1.442695, %v474_v22 }
 0x330   :  { %v489_v27 = vmul.f32 1.442695, %v475_v24  ;;  %v468_v28 = vpop.xlane.xlu1 %467  ;;  %v496_v29 = vsel %vm43_vm0, %v811_v25, 0.0 }
 0x331   :  { %820 = vpow2.f32 %v487_v26  ;;  %v476_v30 = vsub.f32 %v442_v2, %v468_v28  ;;  %497 = vadd.xlane.f32.xlu1 %v496_v29 }
 0x332   :  { %822 = vpow2.f32 %v489_v27 }
 0x333   :  { %v813_v31 = vpop.eup %812  ;;  %v491_v32 = vmul.f32 1.442695, %v476_v30 }
 0x334   :  { %v815_v33 = vpop.eup %814  ;;  %v502_v34 = vsel %vm43_vm0, %v813_v31, 0.0 }
 0x335   :  { %824 = vpow2.f32 %v491_v32  ;;  %503 = vadd.xlane.f32.xlu1 %v502_v34  ;;  %v493_v35 = vsel %vm43_vm0, %v815_v33, 0.0 }
 0x336   :  { %494 = vadd.xlane.f32.xlu0 %v493_v35 }
 0x337   :  { %v817_v36 = vpop.eup %816 }
 0x338   :  { %v499_v37 = vsel %vm43_vm0, %v817_v36, 0.0  ;;  %v1037_v38 = vpop.eup %818 }
 0x339   :  { %v505_v41 = vsel %vm43_vm0, %v1037_v38, 0.0 }
 0x33a   :  { %500 = vadd.xlane.f32.xlu0 %v499_v37 }
 0x33b   :  { %v1039_v39 = vpop.eup %820 }
 0x33c   :  { %v508_v40 = vsel %vm43_vm0, %v1039_v39, 0.0  ;;  %v1045_v42 = vpop.eup %822 }
 0x33d   :  { %509 = vadd.xlane.f32.xlu1 %v508_v40  ;;  %v511_v45 = vsel %vm43_vm0, %v1045_v42, 0.0 }
 0x33e   :  { %506 = vadd.xlane.f32.xlu0 %v505_v41 }
 0x33f   :  { %v1047_v43 = vpop.eup %824 }
 0x340   :  { %v514_v44 = vsel %vm43_vm0, %v1047_v43, 0.0 }
 0x341   :  { %515 = vadd.xlane.f32.xlu1 %v514_v44 }
 0x342   :  { %512 = vadd.xlane.f32.xlu0 %v511_v45 }
 0x3be   :  { %v498_v46 = vpop.xlane.xlu1 %497 }
 0x3bf   :  { %826 = vrcp.f32 %v498_v46 }
 0x3c2   :  { %v504_v47 = vpop.xlane.xlu1 %503 }
 0x3c3   :  { %828 = vrcp.f32 %v504_v47  ;;  %v495_v48 = vpop.xlane.xlu0 %494 }
 0x3c4   :  { %830 = vrcp.f32 %v495_v48 }
 0x3c7   :  { %v501_v49 = vpop.xlane.xlu0 %500 }
 0x3c8   :  { %832 = vrcp.f32 %v501_v49 }
 0x3c9   :  { %v827_v50 = vpop.eup %826 }
 0x3ca   :  { %v526_v51 = vmul.f32 %v827_v50, %v498_v46  ;;  %v510_v52 = vpop.xlane.xlu1 %509 }
 0x3cb   :  { %834 = vrcp.f32 %v510_v52  ;;  %v507_v53 = vpop.xlane.xlu0 %506 }
 0x3cc   :  { %v534_v54 = vsub.f32 2.0, %v526_v51  ;;  %836 = vrcp.f32 %v507_v53 }
 0x3cd   :  { %v829_v55 = vpop.eup %828 }
 0x3ce   :  { %v831_v56 = vpop.eup %830  ;;  %v542_v57 = vmul.f32 %v827_v50, %v534_v54  ;;  %v528_v58 = vmul.f32 %v829_v55, %v504_v47  ;;  %v516_v59 = vpop.xlane.xlu1 %515 }
 0x3cf   :  { %v525_v60 = vmul.f32 %v831_v56, %v495_v48  ;;  %838 = vrcp.f32 %v516_v59  ;;  %v513_v61 = vpop.xlane.xlu0 %512 }
 0x3d0   :  { %v550_v62 = vmul.f32 %v811_v25, %v542_v57  ;;  %v536_v63 = vsub.f32 2.0, %v528_v58  ;;  %840 = vrcp.f32 %v513_v61 }
 0x3d1   :  { %v533_v0 = vsub.f32 2.0, %v525_v60 }
 0x3d2   :  { %v833_v1 = vpop.eup %832  ;;  %558 = vst.msk [vmem:[%s1096_s7 + $0x8] sm:$0xff] %vm43_vm0, %v550_v62  ;;  %v544_v2 = vmul.f32 %v829_v55, %v536_v63 }
 0x3d3   :  { %v541_v3 = vmul.f32 %v831_v56, %v533_v0  ;;  %v527_v4 = vmul.f32 %v833_v1, %v501_v49 }
 0x3d4   :  { %v552_v5 = vmul.f32 %v813_v31, %v544_v2 }
 0x3d5   :  { %v835_v6 = vpop.eup %834  ;;  %v549_v7 = vmul.f32 %v815_v33, %v541_v3  ;;  %v535_v8 = vsub.f32 2.0, %v527_v4 }
 0x3d6   :  { %v837_v9 = vpop.eup %836  ;;  %560 = vst.msk [vmem:[%s1096_s7 + $0x18] sm:$0xff] %vm43_vm0, %v552_v5  ;;  %v530_v10 = vmul.f32 %v835_v6, %v510_v52 }
 0x3d7   :  { %557 = vst.msk [vmem:[%s1096_s7] sm:$0xff] %vm43_vm0, %v549_v7  ;;  %v543_v11 = vmul.f32 %v833_v1, %v535_v8  ;;  %v529_v12 = vmul.f32 %v837_v9, %v507_v53 }
 0x3d8   :  { %v538_v13 = vsub.f32 2.0, %v530_v10 }
 0x3d9   :  { %v839_v14 = vpop.eup %838  ;;  %v551_v15 = vmul.f32 %v817_v36, %v543_v11  ;;  %v537_v16 = vsub.f32 2.0, %v529_v12 }
 0x3da   :  { %v841_v17 = vpop.eup %840  ;;  %v546_v18 = vmul.f32 %v835_v6, %v538_v13  ;;  %v532_v19 = vmul.f32 %v839_v14, %v516_v59 }
 0x3db   :  { %559 = vst.msk [vmem:[%s1096_s7 + $0x10] sm:$0xff] %vm43_vm0, %v551_v15  ;;  %v545_v20 = vmul.f32 %v837_v9, %v537_v16  ;;  %v531_v21 = vmul.f32 %v841_v17, %v513_v61 }
 0x3dc   :  { %v554_v22 = vmul.f32 %v1039_v39, %v546_v18  ;;  %v540_v23 = vsub.f32 2.0, %v532_v19 }
 0x3dd   :  { %v553_v24 = vmul.f32 %v1037_v38, %v545_v20  ;;  %v539_v25 = vsub.f32 2.0, %v531_v21 }
 0x3de   :  { %562 = vst.msk [vmem:[%s1096_s7 + $0x28] sm:$0xff] %vm43_vm0, %v554_v22  ;;  %v548_v26 = vmul.f32 %v839_v14, %v540_v23 }
 0x3df   :  { %561 = vst.msk [vmem:[%s1096_s7 + $0x20] sm:$0xff] %vm43_vm0, %v553_v24  ;;  %v547_v27 = vmul.f32 %v841_v17, %v539_v25 }
 0x3e0   :  { %v556_v28 = vmul.f32 %v1047_v43, %v548_v26 }
 0x3e1   :  { %v555_v29 = vmul.f32 %v1045_v42, %v547_v27 }
 0x3e2   :  { %564 = vst.msk [vmem:[%s1096_s7 + $0x38] sm:$0xff] %vm43_vm0, %v556_v28 }
 0x3e3   :  { %563 = vst.msk [vmem:[%s1096_s7 + $0x30] sm:$0xff] %vm43_vm0, %v555_v29 }

</bundles_post_ra>
